<compile_context>
chip_gen: v7x
topology: tpu7x:2x2x1
jax: 0.10.0
libtpu: 0.0.40
codegen_flags: <defaults>
</compile_context>

<pallas_src>
import functools

import numpy as np

import jax
import jax.numpy as jnp
from jax import lax
from jax.experimental import pallas as pl
from jax.experimental.pallas import tpu as pltpu

BN_EPS = 1e-5
_NEG_LARGE = -1e30  # "minus infinity" pre-baked into the last layer's padded bias lanes


def _encoder_kernel(n_layers, x_ref, w_ref, v_ref, o_ref):
    """Fused forward pass, everything resident in VMEM.

    x_ref : [B, D]      zero-padded activations (D = lane-dense multiple of 128)
    w_ref : [L, D, D]   zero-padded weights, stored as [d_in, d_out] (y = x @ W)
    v_ref : [3L, D]     rows 3i / 3i+1 / 3i+2 = bias / gamma / beta of layer i.
                        The LAST layer's bias row carries -1e30 in its padded lanes,
                        which implements the softmax mask for free.
    o_ref : [B, D]      softmax output, valid in the first d_out lanes
    """
    h = x_ref[...]
    inv_b = 1.0 / h.shape[0]

    for i in range(n_layers):
        w = w_ref[i]                              # [D, D], static index -> MXU matmul
        b = v_ref[3 * i : 3 * i + 1, :]           # [1, D]
        h = jnp.dot(h, w, preferred_element_type=jnp.float32) + b

        if i < n_layers - 1:
            g = v_ref[3 * i + 1 : 3 * i + 2, :]   # [1, D]
            beta = v_ref[3 * i + 2 : 3 * i + 3, :]
            # BatchNorm1d (training mode, biased variance), one-pass statistics:
            # the two sublane reductions are independent and can overlap.
            s1 = jnp.sum(h, axis=0, keepdims=True)
            s2 = jnp.sum(h * h, axis=0, keepdims=True)
            mean = s1 * inv_b
            var = s2 * inv_b - mean * mean
            scale = g * lax.rsqrt(var + BN_EPS)   # rsqrt -> EUP (free slot)
            shift = beta - mean * scale
            h = jnp.maximum(h * scale + shift, 0.0)  # fused affine + ReLU
            # Padded lanes: gamma/beta pads are 0 => scale=shift=0 => lanes stay 0.

    # Numerically-stable softmax. Padded lanes were already pushed to -1e30 by the
    # last layer's bias, so no explicit mask is needed; exp underflows them to 0.
    m = jnp.max(h, axis=1, keepdims=True)
    e = jnp.exp(h - m)
    denom = jnp.sum(e, axis=1, keepdims=True)
    inv = pl.reciprocal(denom, approx=True)       # EUP vrcp
    inv = inv * (2.0 - denom * inv)               # one Newton step -> ~f32 accuracy
    o_ref[...] = (e * inv).astype(o_ref.dtype)


def make_encoder_share(weights, biases, gammas, betas):
    """Packs parameters once (host side) and returns a jitted forward(x) callable.

    weights[i]: [share_dim[i], share_dim[i+1]] (pre-transposed so y = x @ W)
    biases/gammas/betas[i]: [1, share_dim[i+1]]  (gammas/betas of the last layer unused)
    """
    n_layers = len(weights)
    dims = [weights[0].shape[0]] + [w.shape[1] for w in weights]
    d_in0, d_last = dims[0], dims[-1]
    D = max(128, ((max(dims) + 127) // 128) * 128)  # lane-dense padded width

    # --- pack all parameters ONCE into two VMEM-friendly blobs (host-side numpy) ---
    w_blob_np = np.zeros((n_layers, D, D), np.float32)
    v_blob_np = np.zeros((3 * n_layers, D), np.float32)
    for i in range(n_layers):
        w_blob_np[i, : dims[i], : dims[i + 1]] = np.asarray(weights[i], np.float32)
        v_blob_np[3 * i, : dims[i + 1]] = np.asarray(biases[i], np.float32).reshape(-1)
        v_blob_np[3 * i + 1, : dims[i + 1]] = np.asarray(gammas[i], np.float32).reshape(-1)
        v_blob_np[3 * i + 2, : dims[i + 1]] = np.asarray(betas[i], np.float32).reshape(-1)
    # Fold the softmax lane mask into the LAST layer's bias only; intermediate layers
    # must keep zero pads so the "padded lanes stay zero" invariant holds through BN/ReLU.
    v_blob_np[3 * (n_layers - 1), d_last:] = _NEG_LARGE

    w_blob = jnp.asarray(w_blob_np)
    v_blob = jnp.asarray(v_blob_np)

    kernel = functools.partial(_encoder_kernel, n_layers)

    @jax.jit
    def forward(x):
        B = x.shape[0]
        x_pad = jnp.pad(x.astype(jnp.float32), ((0, 0), (0, D - d_in0)))

        flops = 2 * B * sum(dims[i] * dims[i + 1] for i in range(n_layers))
        transcendentals = B * D + (n_layers - 1) * D + B
        bytes_accessed = 4 * (B * D + w_blob.size + v_blob.size + B * D)

        out_pad = pl.pallas_call(
            kernel,
            out_shape=jax.ShapeDtypeStruct((B, D), jnp.float32),
            in_specs=[
                pl.BlockSpec(memory_space=pltpu.MemorySpace.VMEM),
                pl.BlockSpec(memory_space=pltpu.MemorySpace.VMEM),
                pl.BlockSpec(memory_space=pltpu.MemorySpace.VMEM),
            ],
            out_specs=pl.BlockSpec(memory_space=pltpu.MemorySpace.VMEM),
            cost_estimate=pl.CostEstimate(
                flops=flops,
                transcendentals=transcendentals,
                bytes_accessed=bytes_accessed,
            ),
        )(x_pad, w_blob, v_blob)

        # Lane-dense store inside the kernel; logical slice outside (inside the jit).
        return out_pad[:, :d_last]
        # TODO(synk): if many independent encoder instances / mini-batches are run, stack
        # them along a leading axis and add a "parallel" grid axis (per-instance BN stats)
        # to raise MXU row occupancy and use both v7x TensorCores; and for much larger
        # layer widths, stream w_blob one layer at a time (memory_space=pl.ANY + double-
        # buffered make_async_copy) to respect the v7x 64 MiB VMEM ceiling.

    return forward


def _reference_forward(x, weights, biases, gammas, betas):
    """Plain-JAX reference mirroring the PyTorch forward (train-mode BN)."""
    n_layers = len(weights)
    h = x.astype(jnp.float32)
    for i in range(n_layers):
        h = h @ weights[i] + biases[i]
        if i < n_layers - 1:
            mean = jnp.mean(h, axis=0, keepdims=True)
            var = jnp.mean((h - mean) ** 2, axis=0, keepdims=True)
            h = (h - mean) / jnp.sqrt(var + BN_EPS) * gammas[i] + betas[i]
            h = jnp.maximum(h, 0.0)
    return jax.nn.softmax(h, axis=1)


if __name__ == "__main__":
    # Deterministic setup consistent with Encoder_share(share_dim=[32, 64, 48, 16])
    share_dim = [32, 64, 48, 16]
    B = 8
    n_layers = len(share_dim) - 1

    key = jax.random.PRNGKey(0)
    key, xk = jax.random.split(key)
    x = jax.random.normal(xk, (B, share_dim[0]), dtype=jnp.float32)

    weights, biases, gammas, betas = [], [], [], []
    for i in range(n_layers):
        d_in, d_out = share_dim[i], share_dim[i + 1]
        key, wk, bk = jax.random.split(key, 3)
        bound = 1.0 / float(d_in) ** 0.5
        # PyTorch-style uniform init; weight stored pre-transposed as [d_in, d_out].
        w = jax.random.uniform(wk, (d_in, d_out), jnp.float32, -bound, bound)
        b = jax.random.uniform(bk, (1, d_out), jnp.float32, -bound, bound)
        weights.append(w)
        biases.append(b)
        # BatchNorm1d default affine init: weight=1, bias=0 (unused for last layer).
        gammas.append(jnp.ones((1, d_out), jnp.float32))
        betas.append(jnp.zeros((1, d_out), jnp.float32))

    forward = make_encoder_share(weights, biases, gammas, betas)  # packs params once
    out = forward(x)
    out = jax.block_until_ready(out)

    ref = _reference_forward(x, weights, biases, gammas, betas)
    assert out.shape == (B, share_dim[-1])
    assert jnp.allclose(out, ref, atol=1e-4, rtol=1e-4), "mismatch vs reference"
    # softmax rows sum to 1
    assert jnp.allclose(jnp.sum(out, axis=1), 1.0, atol=1e-5)

    print("KERNEL_OK")
</pallas_src>

<mosaic_0001>
module attributes {stable_mosaic.version = 11 : i64} {
  func.func @_encoder_kernel(%arg0: memref<8x128xf32, #tpu.memory_space<vmem>>, %arg1: memref<3x128x128xf32, #tpu.memory_space<vmem>>, %arg2: memref<9x128xf32, #tpu.memory_space<vmem>>, %arg3: memref<8x128xf32, #tpu.memory_space<vmem>>) attributes {dimension_semantics = [], scalar_prefetch = 0 : i64, scratch_operands = 0 : i64, tpu.core_type = #tpu.core_type<tc>} {
    %c0 = arith.constant 0 : index
    %c0_0 = arith.constant 0 : index
    %0 = vector.load %arg0[%c0, %c0_0] : memref<8x128xf32, #tpu.memory_space<vmem>>, vector<8x128xf32>
    %c0_1 = arith.constant 0 : index
    %c0_2 = arith.constant 0 : index
    %c0_3 = arith.constant 0 : index
    %1 = vector.load %arg1[%c0_1, %c0_2, %c0_3] : memref<3x128x128xf32, #tpu.memory_space<vmem>>, vector<1x128x128xf32>
    %2 = vector.shape_cast %1 : vector<1x128x128xf32> to vector<128x128xf32>
    %c0_4 = arith.constant 0 : index
    %c0_5 = arith.constant 0 : index
    %3 = vector.load %arg2[%c0_4, %c0_5] : memref<9x128xf32, #tpu.memory_space<vmem>>, vector<1x128xf32>
    %cst = arith.constant dense<0.000000e+00> : vector<8x128xf32>
    %4 = tpu.matmul %0, %2, %cst {dimension_numbers = #tpu.dot_dimension_numbers<[1], [0], [0], [1], [0, 0, 1, 1], [], []>} : vector<8x128xf32>, vector<128x128xf32>, vector<8x128xf32> -> vector<8x128xf32>
    %5 = vector.broadcast %3 : vector<1x128xf32> to vector<8x128xf32>
    %6 = arith.addf %4, %5 : vector<8x128xf32>
    %c1 = arith.constant 1 : index
    %c0_6 = arith.constant 0 : index
    %7 = vector.load %arg2[%c1, %c0_6] : memref<9x128xf32, #tpu.memory_space<vmem>>, vector<1x128xf32>
    %c2 = arith.constant 2 : index
    %c0_7 = arith.constant 0 : index
    %8 = vector.load %arg2[%c2, %c0_7] : memref<9x128xf32, #tpu.memory_space<vmem>>, vector<1x128xf32>
    %cst_8 = arith.constant dense<0.000000e+00> : vector<128xf32>
    %9 = vector.multi_reduction <add>, %6, %cst_8 [0] : vector<8x128xf32> to vector<128xf32>
    %10 = vector.shape_cast %9 : vector<128xf32> to vector<1x128xf32>
    %11 = arith.mulf %6, %6 : vector<8x128xf32>
    %cst_9 = arith.constant dense<0.000000e+00> : vector<128xf32>
    %12 = vector.multi_reduction <add>, %11, %cst_9 [0] : vector<8x128xf32> to vector<128xf32>
    %13 = vector.shape_cast %12 : vector<128xf32> to vector<1x128xf32>
    %cst_10 = arith.constant 1.250000e-01 : f32
    %14 = vector.broadcast %cst_10 : f32 to vector<1x128xf32>
    %15 = arith.mulf %10, %14 : vector<1x128xf32>
    %cst_11 = arith.constant 1.250000e-01 : f32
    %16 = vector.broadcast %cst_11 : f32 to vector<1x128xf32>
    %17 = arith.mulf %13, %16 : vector<1x128xf32>
    %18 = arith.mulf %15, %15 : vector<1x128xf32>
    %19 = arith.subf %17, %18 : vector<1x128xf32>
    %cst_12 = arith.constant 9.99999974E-6 : f32
    %20 = vector.broadcast %cst_12 : f32 to vector<1x128xf32>
    %21 = arith.addf %19, %20 : vector<1x128xf32>
    %22 = math.rsqrt %21 : vector<1x128xf32>
    %23 = arith.mulf %7, %22 : vector<1x128xf32>
    %24 = arith.mulf %15, %23 : vector<1x128xf32>
    %25 = arith.subf %8, %24 : vector<1x128xf32>
    %26 = vector.broadcast %23 : vector<1x128xf32> to vector<8x128xf32>
    %27 = arith.mulf %6, %26 : vector<8x128xf32>
    %28 = vector.broadcast %25 : vector<1x128xf32> to vector<8x128xf32>
    %29 = arith.addf %27, %28 : vector<8x128xf32>
    %cst_13 = arith.constant 0.000000e+00 : f32
    %30 = vector.broadcast %cst_13 : f32 to vector<8x128xf32>
    %31 = arith.maximumf %29, %30 : vector<8x128xf32>
    %c1_14 = arith.constant 1 : index
    %c0_15 = arith.constant 0 : index
    %c0_16 = arith.constant 0 : index
    %32 = vector.load %arg1[%c1_14, %c0_15, %c0_16] : memref<3x128x128xf32, #tpu.memory_space<vmem>>, vector<1x128x128xf32>
    %33 = vector.shape_cast %32 : vector<1x128x128xf32> to vector<128x128xf32>
    %c3 = arith.constant 3 : index
    %c0_17 = arith.constant 0 : index
    %34 = vector.load %arg2[%c3, %c0_17] : memref<9x128xf32, #tpu.memory_space<vmem>>, vector<1x128xf32>
    %cst_18 = arith.constant dense<0.000000e+00> : vector<8x128xf32>
    %35 = tpu.matmul %31, %33, %cst_18 {dimension_numbers = #tpu.dot_dimension_numbers<[1], [0], [0], [1], [0, 0, 1, 1], [], []>} : vector<8x128xf32>, vector<128x128xf32>, vector<8x128xf32> -> vector<8x128xf32>
    %36 = vector.broadcast %34 : vector<1x128xf32> to vector<8x128xf32>
    %37 = arith.addf %35, %36 : vector<8x128xf32>
    %c4 = arith.constant 4 : index
    %c0_19 = arith.constant 0 : index
    %38 = vector.load %arg2[%c4, %c0_19] : memref<9x128xf32, #tpu.memory_space<vmem>>, vector<1x128xf32>
    %c5 = arith.constant 5 : index
    %c0_20 = arith.constant 0 : index
    %39 = vector.load %arg2[%c5, %c0_20] : memref<9x128xf32, #tpu.memory_space<vmem>>, vector<1x128xf32>
    %cst_21 = arith.constant dense<0.000000e+00> : vector<128xf32>
    %40 = vector.multi_reduction <add>, %37, %cst_21 [0] : vector<8x128xf32> to vector<128xf32>
    %41 = vector.shape_cast %40 : vector<128xf32> to vector<1x128xf32>
    %42 = arith.mulf %37, %37 : vector<8x128xf32>
    %cst_22 = arith.constant dense<0.000000e+00> : vector<128xf32>
    %43 = vector.multi_reduction <add>, %42, %cst_22 [0] : vector<8x128xf32> to vector<128xf32>
    %44 = vector.shape_cast %43 : vector<128xf32> to vector<1x128xf32>
    %cst_23 = arith.constant 1.250000e-01 : f32
    %45 = vector.broadcast %cst_23 : f32 to vector<1x128xf32>
    %46 = arith.mulf %41, %45 : vector<1x128xf32>
    %cst_24 = arith.constant 1.250000e-01 : f32
    %47 = vector.broadcast %cst_24 : f32 to vector<1x128xf32>
    %48 = arith.mulf %44, %47 : vector<1x128xf32>
    %49 = arith.mulf %46, %46 : vector<1x128xf32>
    %50 = arith.subf %48, %49 : vector<1x128xf32>
    %cst_25 = arith.constant 9.99999974E-6 : f32
    %51 = vector.broadcast %cst_25 : f32 to vector<1x128xf32>
    %52 = arith.addf %50, %51 : vector<1x128xf32>
    %53 = math.rsqrt %52 : vector<1x128xf32>
    %54 = arith.mulf %38, %53 : vector<1x128xf32>
    %55 = arith.mulf %46, %54 : vector<1x128xf32>
    %56 = arith.subf %39, %55 : vector<1x128xf32>
    %57 = vector.broadcast %54 : vector<1x128xf32> to vector<8x128xf32>
    %58 = arith.mulf %37, %57 : vector<8x128xf32>
    %59 = vector.broadcast %56 : vector<1x128xf32> to vector<8x128xf32>
    %60 = arith.addf %58, %59 : vector<8x128xf32>
    %cst_26 = arith.constant 0.000000e+00 : f32
    %61 = vector.broadcast %cst_26 : f32 to vector<8x128xf32>
    %62 = arith.maximumf %60, %61 : vector<8x128xf32>
    %c2_27 = arith.constant 2 : index
    %c0_28 = arith.constant 0 : index
    %c0_29 = arith.constant 0 : index
    %63 = vector.load %arg1[%c2_27, %c0_28, %c0_29] : memref<3x128x128xf32, #tpu.memory_space<vmem>>, vector<1x128x128xf32>
    %64 = vector.shape_cast %63 : vector<1x128x128xf32> to vector<128x128xf32>
    %c6 = arith.constant 6 : index
    %c0_30 = arith.constant 0 : index
    %65 = vector.load %arg2[%c6, %c0_30] : memref<9x128xf32, #tpu.memory_space<vmem>>, vector<1x128xf32>
    %cst_31 = arith.constant dense<0.000000e+00> : vector<8x128xf32>
    %66 = tpu.matmul %62, %64, %cst_31 {dimension_numbers = #tpu.dot_dimension_numbers<[1], [0], [0], [1], [0, 0, 1, 1], [], []>} : vector<8x128xf32>, vector<128x128xf32>, vector<8x128xf32> -> vector<8x128xf32>
    %67 = vector.broadcast %65 : vector<1x128xf32> to vector<8x128xf32>
    %68 = arith.addf %66, %67 : vector<8x128xf32>
    %cst_32 = arith.constant dense<0xFF800000> : vector<8xf32>
    %69 = vector.multi_reduction <maximumf>, %68, %cst_32 [1] : vector<8x128xf32> to vector<8xf32>
    %70 = vector.shape_cast %69 : vector<8xf32> to vector<8x1xf32>
    %71 = vector.broadcast %70 : vector<8x1xf32> to vector<8x128xf32>
    %72 = arith.subf %68, %71 : vector<8x128xf32>
    %73 = math.exp %72 : vector<8x128xf32>
    %cst_33 = arith.constant dense<0.000000e+00> : vector<8xf32>
    %74 = vector.multi_reduction <add>, %73, %cst_33 [1] : vector<8x128xf32> to vector<8xf32>
    %75 = vector.shape_cast %74 : vector<8xf32> to vector<8x1xf32>
    %76 = tpu.reciprocal %75 {approx = true} : vector<8x1xf32> -> vector<8x1xf32>
    %77 = arith.mulf %75, %76 : vector<8x1xf32>
    %cst_34 = arith.constant 2.000000e+00 : f32
    %78 = vector.broadcast %cst_34 : f32 to vector<8x1xf32>
    %79 = arith.subf %78, %77 : vector<8x1xf32>
    %80 = arith.mulf %76, %79 : vector<8x1xf32>
    %81 = vector.broadcast %80 : vector<8x1xf32> to vector<8x128xf32>
    %82 = arith.mulf %73, %81 : vector<8x128xf32>
    %c0_35 = arith.constant 0 : index
    %c0_36 = arith.constant 0 : index
    %83 = vector.load %arg3[%c0_35, %c0_36] : memref<8x128xf32, #tpu.memory_space<vmem>>, vector<8x128xf32>
    tpu.vector_store %arg3[%c0_35, %c0_36], %82 {strides = array<i32>} : memref<8x128xf32, #tpu.memory_space<vmem>>, vector<8x128xf32>,
    return
  }
}

</mosaic_0001>

<bundles_post_ra>
// kernel: forward.1
= control target key start
LH: loop header
LB: loop body
LE: loop exit
PB: predicated region body
PF: predicated region fallthrough
CT: control target
= control target key end

     0   :  { %8 = vsyncpa [#allocation3], 0  ;;  %s805_s0 = inlined_call_operand.vmem [shape: f32[8,128], index: 0, kind: input, shape index: {}]   ;;  %s806_s1 = inlined_call_operand.hbm [shape: f32[3,128,128], index: 1, kind: input, shape index: {}]   ;;  %s807_s2 = inlined_call_operand.vmem [shape: f32[9,128], index: 2, kind: input, shape index: {}]   ;;  %s808_s3 = inlined_call_operand.hbm [shape: f32[8,128], index: 3, kind: output, shape index: {}]  }
   0x1   :  { %9 = vsyncpa [#allocation4], 0  ;;  %s697_s12 = smov [#allocation2]   ;;  %s649_s16 = scalar_lea.hbm %s806_s1, 6144 }
   0x2   :  { %s17_s13 = sshll.u32 %s697_s12, 4  ;;  %p650_p0 = scmp.ne.s32.totalorder %s806_s1, %s649_s16  ;;  %s18_s13 = int_to_ptr.vmem [resolvable:$true] %s17_s13 }
   0x3   :  { %p653_p1 = scmp.lt.u32.totalorder %s649_s16, %s806_s1 }
   0x5   :  { %p655_p2 = pnand %p653_p1, %p650_p0 }
   0x7   :  { %658 = shalt.err (!%p655_p2)
}
   0x8   :  { %s659_s21 = scalar_lea.vmem %s18_s13, 6144  ;;  %p664_p4 = scmp.lt.s32.totalorder %s18_s13, %s18_s13 }
   0x9   :  { %p660_p3 = scmp.ne.s32.totalorder %s18_s13, %s659_s21  ;;  %p665_p5 = scmp.lt.s32.totalorder %s659_s21, %s659_s21 }
   0xb   :  { %p666_p6 = por %p665_p5, %p664_p4 }
   0xd   :  { %p667_p7 = pnand %p666_p6, %p660_p3 }
   0xf   :  { %670 = shalt.err (!%p667_p7)
}
  0x10   :  { %s698_s22 = smov 128   ;;  %s699_s23 = smov 8  }
  0x11   :  { %23 = dma.hbm_to_vmem [thread:$0]  %s806_s1, 6144, %s18_s13, [#allocation3], %s698_s22, %s698_s22, %s699_s23  }
  0x12   :  { %693 = dma.done.wait [#allocation3], 6144  }
  0x13   :  { %694 = vsyncadd [#allocation3], 4294961152  ;;  %v700_v0 = vmov 0.0|0.0   ;;  %vm701_vm0 = vmmov 0   ;;  %v702_v1 = vmov 0.0   ;;  %v30_v2 = vld [vmem:[#allocation2] sm:$0xff] }
  0x14   :  { %562 = vmatprep.subr.bf16.mxu0 %v700_v0  ;;  %489 = vmatprep.mubr.msk.f32.mxu0 %vm701_vm0, %v702_v1  ;;  %v31_v3 = vld [vmem:[#allocation2 + $0x8] sm:$0xff]  ;;  %v32_v4 = vld [vmem:[#allocation2 + $0x10] sm:$0xff]  ;;  %v33_v6 = vld [vmem:[#allocation2 + $0x18] sm:$0xff]  ;;  %s703_s13 = smov [#allocation5]  }
  0x15   :  { %586 = vmatprep.subr.bf16.mxu1 %v700_v0  ;;  %524 = vmatprep.mubr.msk.f32.mxu1 %vm701_vm0, %v702_v1  ;;  %v563_v5 = vpack.c.bf16 %v31_v3, %v30_v2  ;;  %v566_v7 = vpack.c.bf16 %v33_v6, %v32_v4  ;;  %v34_v8 = vld [vmem:[#allocation2 + $0x20] sm:$0xff]  ;;  %v35_v9 = vld [vmem:[#allocation2 + $0x28] sm:$0xff]  ;;  %v36_v11 = vld [vmem:[#allocation2 + $0x30] sm:$0xff]  ;;  %s394_s14 = sshll.u32 %s703_s13, 4  ;;  %s395_s14 = int_to_ptr.vmem [resolvable:$true] %s394_s14 }
  0x16   :  { %v569_v10 = vpack.c.bf16 %v35_v9, %v34_v8  ;;  %v37_v12 = vld [vmem:[#allocation2 + $0x38] sm:$0xff]  ;;  %v38_v14 = vld [vmem:[#allocation2 + $0x40] sm:$0xff]  ;;  %v39_v15 = vld [vmem:[#allocation2 + $0x48] sm:$0xff]  ;;  %p676_p9 = scmp.lt.s32.totalorder %s395_s14, %s395_s14 }
  0x17   :  { %564 = vmatpush3.bf16.msra.mxu0 %v563_v5  ;;  %v572_v13 = vpack.c.bf16 %v37_v12, %v36_v11  ;;  %v575_v16 = vpack.c.bf16 %v39_v15, %v38_v14  ;;  %v40_v17 = vld [vmem:[#allocation2 + $0x50] sm:$0xff]  ;;  %v41_v18 = vld [vmem:[#allocation2 + $0x58] sm:$0xff]  ;;  %v42_v20 = vld [vmem:[#allocation2 + $0x60] sm:$0xff] }
  0x18   :  { %565 = vmatprep.subr.bf16.mxu0 %v700_v0  ;;  %v578_v19 = vpack.c.bf16 %v41_v18, %v40_v17  ;;  %v43_v21 = vld [vmem:[#allocation2 + $0x68] sm:$0xff]  ;;  %v44_v23 = vld [vmem:[#allocation2 + $0x70] sm:$0xff]  ;;  %v45_v24 = vld [vmem:[#allocation2 + $0x78] sm:$0xff] }
  0x19   :  { %v581_v22 = vpack.c.bf16 %v43_v21, %v42_v20  ;;  %v584_v25 = vpack.c.bf16 %v45_v24, %v44_v23  ;;  %v29_v26 = vld [vmem:[%s805_s0] sm:$0xff]  ;;  %v157_v27 = vld [vmem:[#allocation2 + $0x80] sm:$0xff]  ;;  %v159_v30 = vld [vmem:[#allocation2 + $0x90] sm:$0xff] }
  0x1a   :  { %v158_v28 = vld [vmem:[#allocation2 + $0x88] sm:$0xff]  ;;  %v160_v31 = vld [vmem:[#allocation2 + $0x98] sm:$0xff]  ;;  %v161_v33 = vld [vmem:[#allocation2 + $0xa0] sm:$0xff] }
  0x1b   :  { %567 = vmatpush3.bf16.msra.mxu0 %v566_v7  ;;  %v587_v29 = vpack.c.bf16 %v158_v28, %v157_v27  ;;  %v590_v32 = vpack.c.bf16 %v160_v31, %v159_v30  ;;  %v162_v34 = vld [vmem:[#allocation2 + $0xa8] sm:$0xff]  ;;  %v163_v36 = vld [vmem:[#allocation2 + $0xb0] sm:$0xff]  ;;  %v164_v37 = vld [vmem:[#allocation2 + $0xb8] sm:$0xff] }
  0x1c   :  { %568 = vmatprep.subr.bf16.mxu0 %v700_v0  ;;  %v593_v35 = vpack.c.bf16 %v162_v34, %v161_v33  ;;  %v596_v38 = vpack.c.bf16 %v164_v37, %v163_v36  ;;  %v165_v39 = vld [vmem:[#allocation2 + $0xc0] sm:$0xff]  ;;  %v166_v40 = vld [vmem:[#allocation2 + $0xc8] sm:$0xff]  ;;  %v167_v42 = vld [vmem:[#allocation2 + $0xd0] sm:$0xff] }
  0x1d   :  { %588 = vmatpush3.bf16.msra.mxu1 %v587_v29  ;;  %v599_v41 = vpack.c.bf16 %v166_v40, %v165_v39  ;;  %v168_v43 = vld [vmem:[#allocation2 + $0xd8] sm:$0xff]  ;;  %v169_v45 = vld [vmem:[#allocation2 + $0xe0] sm:$0xff]  ;;  %v170_v46 = vld [vmem:[#allocation2 + $0xe8] sm:$0xff] }
  0x1e   :  { %589 = vmatprep.subr.bf16.mxu1 %v700_v0  ;;  %v602_v44 = vpack.c.bf16 %v168_v43, %v167_v42  ;;  %v605_v47 = vpack.c.bf16 %v170_v46, %v169_v45  ;;  %v171_v48 = vld [vmem:[#allocation2 + $0xf0] sm:$0xff]  ;;  %v172_v49 = vld [vmem:[#allocation2 + $0xf8] sm:$0xff]  ;;  %v403_v51 = vld [vmem:[%s807_s2] ss:$0 sm:$0xff] }
  0x1f   :  { %570 = vmatpush3.bf16.msra.mxu0 %v569_v10  ;;  %v608_v50 = vpack.c.bf16 %v172_v49, %v171_v48  ;;  %v145_v10 = vlaneseq  ;;  %v121_v12 = vld [vmem:[%s807_s2 + $0x1] sm:$0x1]  ;;  %v284_v24 = vld [vmem:[#allocation2 + $0x100] sm:$0xff]  ;;  %v286_v27 = vld [vmem:[#allocation2 + $0x110] sm:$0xff] }
  0x20   :  { %571 = vmatprep.subr.bf16.mxu0 %v700_v0  ;;  %v287_v28 = vld [vmem:[#allocation2 + $0x118] sm:$0xff]  ;;  %v288_v30 = vld [vmem:[#allocation2 + $0x120] sm:$0xff]  ;;  %v289_v31 = vld [vmem:[#allocation2 + $0x128] sm:$0xff] }
  0x21   :  { %591 = vmatpush3.bf16.msra.mxu1 %v590_v32  ;;  %v146_v11 = vshrl.u32 %v145_v10, 7  ;;  %v614_v29 = vpack.c.bf16 %v287_v28, %v286_v27  ;;  %v617_v32 = vpack.c.bf16 %v289_v31, %v288_v30  ;;  %v290_v33 = vld [vmem:[#allocation2 + $0x130] sm:$0xff]  ;;  %v291_v34 = vld [vmem:[#allocation2 + $0x138] sm:$0xff]  ;;  %v292_v36 = vld [vmem:[#allocation2 + $0x140] sm:$0xff] }
  0x22   :  { %592 = vmatprep.subr.bf16.mxu1 %v700_v0  ;;  %v293_v37 = vld [vmem:[#allocation2 + $0x148] sm:$0xff]  ;;  %v294_v39 = vld [vmem:[#allocation2 + $0x150] sm:$0xff]  ;;  %v295_v40 = vld [vmem:[#allocation2 + $0x158] sm:$0xff] }
  0x23   :  { %573 = vmatpush3.bf16.msra.mxu0 %v572_v13  ;;  %v765_v13 = vsub.s32 0, %v146_v11  ;;  %v296_v42 = vld [vmem:[#allocation2 + $0x160] sm:$0xff]  ;;  %v297_v43 = vld [vmem:[#allocation2 + $0x168] sm:$0xff]  ;;  %v298_v45 = vld [vmem:[#allocation2 + $0x170] sm:$0xff] }
  0x24   :  { %574 = vmatprep.subr.bf16.mxu0 %v700_v0  ;;  %v299_v46 = vld [vmem:[#allocation2 + $0x178] sm:$0xff]  ;;  %v404_v48 = vld [vmem:[%s807_s2 + $0x3] ss:$0 sm:$0xff] }
  0x25   :  { %594 = vmatpush3.bf16.msra.mxu1 %v593_v35  ;;  %v620_v35 = vpack.c.bf16 %v291_v34, %v290_v33 }
  0x26   :  { %595 = vmatprep.subr.bf16.mxu1 %v700_v0 }
  0x27   :  { %576 = vmatpush3.bf16.msra.mxu0 %v575_v16  ;;  %v122_v16 = vld [vmem:[%s807_s2 + $0x2] sm:$0x1] }
  0x28   :  { %577 = vmatprep.subr.bf16.mxu0 %v700_v0 }
  0x29   :  { %597 = vmatpush3.bf16.msra.mxu1 %v596_v38  ;;  %v623_v38 = vpack.c.bf16 %v293_v37, %v292_v36 }
  0x2a   :  { %598 = vmatprep.subr.bf16.mxu1 %v700_v0 }
  0x2b   :  { %579 = vmatpush3.bf16.msra.mxu0 %v578_v19 }
  0x2c   :  { %580 = vmatprep.subr.bf16.mxu0 %v700_v0 }
  0x2d   :  { %600 = vmatpush3.bf16.msra.mxu1 %v599_v41  ;;  %v626_v41 = vpack.c.bf16 %v295_v40, %v294_v39 }
  0x2e   :  { %601 = vmatprep.subr.bf16.mxu1 %v700_v0 }
  0x2f   :  { %582 = vmatpush3.bf16.msra.mxu0 %v581_v22 }
  0x30   :  { %583 = vmatprep.subr.bf16.mxu0 %v700_v0 }
  0x31   :  { %603 = vmatpush3.bf16.msra.mxu1 %v602_v44  ;;  %v629_v44 = vpack.c.bf16 %v297_v43, %v296_v42 }
  0x32   :  { %604 = vmatprep.subr.bf16.mxu1 %v700_v0 }
  0x33   :  { %585 = vmatpush3.bf16.msra.mxu0 %v584_v25  ;;  %v285_v25 = vld [vmem:[#allocation2 + $0x108] sm:$0xff] }
  0x34   :  { %610 = vmatprep.subr.bf16.mxu0 %v700_v0 }
  0x35   :  { %606 = vmatpush3.bf16.msra.mxu1 %v605_v47  ;;  %v632_v47 = vpack.c.bf16 %v299_v46, %v298_v45 }
  0x36   :  { %490 = vmatmul.mubr.f32.vlgmr.msra.gmra.mrb[0].mxu0 %v29_v26  ;;  %607 = vmatprep.subr.bf16.mxu1 %v700_v0  ;;  %v611_v26 = vpack.c.bf16 %v285_v25, %v284_v24 }
  0x37   :  { %559 = vmatprep.mubr.msk.f32.mxu0 %vm701_vm0, %v702_v1 }
  0x38   :  { %612 = vmatpush3.bf16.msra.mxu0 %v611_v26 }
  0x39   :  { %609 = vmatpush3.bf16.msra.mxu1 %v608_v50  ;;  %613 = vmatprep.subr.bf16.mxu0 %v700_v0 }
  0x3c   :  { %615 = vmatpush3.bf16.msra.mxu0 %v614_v29 }
  0x3d   :  { %616 = vmatprep.subr.bf16.mxu0 %v700_v0 }
  0x40   :  { %618 = vmatpush3.bf16.msra.mxu0 %v617_v32 }
  0x41   :  { %619 = vmatprep.subr.bf16.mxu0 %v700_v0 }
  0x44   :  { %621 = vmatpush3.bf16.msra.mxu0 %v620_v35 }
  0x45   :  { %622 = vmatprep.subr.bf16.mxu0 %v700_v0 }
  0x48   :  { %624 = vmatpush3.bf16.msra.mxu0 %v623_v38 }
  0x49   :  { %625 = vmatprep.subr.bf16.mxu0 %v700_v0 }
  0x4c   :  { %627 = vmatpush3.bf16.msra.mxu0 %v626_v41 }
  0x4d   :  { %628 = vmatprep.subr.bf16.mxu0 %v700_v0 }
  0x50   :  { %630 = vmatpush3.bf16.msra.mxu0 %v629_v44 }
  0x51   :  { %631 = vmatprep.subr.bf16.mxu0 %v700_v0 }
  0x54   :  { %633 = vmatpush3.bf16.msra.mxu0 %v632_v47 }
 0x109   :  { %v117_v52 = vpop.f32.mrb[0].mxu0 }
 0x10a   :  { %v118_v53 = vadd.f32 %v403_v51, %v117_v52  ;;  %v491_v54 = vpop.f32.mrb[1].mxu0 }
 0x10c   :  { %v123_v55 = vrot.slane %v118_v53, 4  ;;  %v129_v56 = vmul.f32 %v118_v53, %v118_v53 }
 0x10e   :  { %v124_v57 = vadd.f32 %v123_v55, %v118_v53  ;;  %v130_v58 = vrot.slane %v129_v56, 4 }
 0x110   :  { %v125_v59 = vrot.slane %v124_v57, 2  ;;  %v131_v60 = vadd.f32 %v130_v58, %v129_v56 }
 0x112   :  { %v126_v61 = vadd.f32 %v125_v59, %v124_v57  ;;  %v132_v62 = vrot.slane %v131_v60, 2 }
 0x114   :  { %v127_v63 = vrot.slane %v126_v61, 1  ;;  %v133_v1 = vadd.f32 %v132_v62, %v131_v60 }
 0x116   :  { %v128_v2 = vadd.f32 %v127_v63, %v126_v61  ;;  %v134_v3 = vrot.slane %v133_v1, 1 }
 0x118   :  { %v135_v4 = vadd.f32 %v134_v3, %v133_v1  ;;  %v136_v5 = vmul.f32 0.125, %v128_v2 }
 0x11a   :  { %v137_v6 = vmul.f32 0.125, %v135_v4  ;;  %v138_v7 = vmul.f32 %v136_v5, %v136_v5 }
 0x11c   :  { %v139_v8 = vsub.f32 %v137_v6, %v138_v7  ;;  %v248_v6 = vld [vmem:[%s807_s2 + $0x4] sm:$0x1] }
 0x11e   :  { %v140_v9 = vadd.f32 1e-05, %v139_v8 }
 0x120   :  { %641 = vrsqrt.f32 %v140_v9  ;;  %v249_v9 = vld [vmem:[%s807_s2 + $0x5] sm:$0x1] }
 0x12a   :  { %v642_v14 = vpop.eup %641 }
 0x12b   :  { %v142_v15 = vmul.f32 %v642_v14, %v121_v12 }
 0x12d   :  { %v143_v17 = vmul.f32 %v142_v15, %v136_v5  ;;  %v148_v18 = vrot.slane %v142_v15, %v765_v13 }
 0x12f   :  { %v144_v19 = vsub.f32 %v122_v16, %v143_v17  ;;  %v149_v20 = vmul.f32 %v148_v18, %v118_v53  ;;  %v405_v18 = vld [vmem:[%s807_s2 + $0x6] ss:$0 sm:$0xff]  ;;  %s671_s2 = scalar_lea.vmem %s395_s14, 128 }
 0x130   :  { %p672_p8 = scmp.ne.s32.totalorder %s395_s14, %s671_s2  ;;  %p677_p10 = scmp.lt.s32.totalorder %s671_s2, %s671_s2 }
 0x131   :  { %v153_v21 = vrot.slane %v144_v19, %v765_v13 }
 0x132   :  { %p678_p11 = por %p677_p10, %p676_p9 }
 0x133   :  { %v154_v22 = vadd.f32 %v153_v21, %v149_v20 }
 0x134   :  { %p679_p12 = pnand %p678_p11, %p672_p8 }
 0x135   :  { %v155_v23 = vmax.f32 %v154_v22, 0.0 }
 0x137   :  { %525 = vmatmul.mubr.f32.vlgmr.msra.gmra.mrb[0].mxu1 %v155_v23 }
 0x20a   :  { %v244_v49 = vpop.f32.mrb[0].mxu1 }
 0x20b   :  { %v245_v50 = vadd.f32 %v404_v48, %v244_v49  ;;  %v526_v51 = vpop.f32.mrb[1].mxu1 }
 0x20d   :  { %v250_v52 = vrot.slane %v245_v50, 4  ;;  %v256_v53 = vmul.f32 %v245_v50, %v245_v50 }
 0x20f   :  { %v251_v54 = vadd.f32 %v250_v52, %v245_v50  ;;  %v257_v55 = vrot.slane %v256_v53, 4 }
 0x211   :  { %v252_v56 = vrot.slane %v251_v54, 2  ;;  %v258_v57 = vadd.f32 %v257_v55, %v256_v53 }
 0x213   :  { %v253_v58 = vadd.f32 %v252_v56, %v251_v54  ;;  %v259_v59 = vrot.slane %v258_v57, 2 }
 0x215   :  { %v254_v60 = vrot.slane %v253_v58, 1  ;;  %v260_v61 = vadd.f32 %v259_v59, %v258_v57 }
 0x217   :  { %v255_v62 = vadd.f32 %v254_v60, %v253_v58  ;;  %v261_v0 = vrot.slane %v260_v61, 1 }
 0x219   :  { %v262_v63 = vadd.f32 %v261_v0, %v260_v61  ;;  %v263_v1 = vmul.f32 0.125, %v255_v62 }
 0x21b   :  { %v264_v2 = vmul.f32 0.125, %v262_v63  ;;  %v265_v3 = vmul.f32 %v263_v1, %v263_v1 }
 0x21d   :  { %v266_v4 = vsub.f32 %v264_v2, %v265_v3 }
 0x21f   :  { %v267_v5 = vadd.f32 1e-05, %v266_v4 }
 0x221   :  { %643 = vrsqrt.f32 %v267_v5 }
 0x22b   :  { %v644_v7 = vpop.eup %643 }
 0x22c   :  { %v269_v8 = vmul.f32 %v644_v7, %v248_v6 }
 0x22e   :  { %v275_v10 = vrot.slane %v269_v8, %v765_v13  ;;  %v270_v11 = vmul.f32 %v269_v8, %v263_v1 }
 0x230   :  { %v271_v12 = vsub.f32 %v249_v9, %v270_v11  ;;  %v276_v14 = vmul.f32 %v275_v10, %v245_v50 }
 0x232   :  { %v280_v15 = vrot.slane %v271_v12, %v765_v13 }
 0x234   :  { %v281_v16 = vadd.f32 %v280_v15, %v276_v14 }
 0x236   :  { %v282_v17 = vmax.f32 %v281_v16, 0.0 }
 0x238   :  { %560 = vmatmul.mubr.f32.vlgmr.msra.gmra.mrb[2].mxu0 %v282_v17 }
 0x30b   :  { %v371_v19 = vpop.f32.mrb[2].mxu0 }
 0x30c   :  { %v372_v20 = vadd.f32 %v405_v18, %v371_v19  ;;  %v561_v21 = vpop.f32.mrb[3].mxu0 }
 0x30e   :  { %375 = vmax.xlane.f32.xlu0 %v372_v20 }
 0x39b   :  { %v376_v22 = vpop.xlane.xlu0 %375 }
 0x39c   :  { %v377_v23 = vsub.f32 %v372_v20, %v376_v22 }
 0x39e   :  { %v378_v24 = vmul.f32 1.442695, %v377_v23 }
 0x3a0   :  { %645 = vpow2.f32 %v378_v24 }
 0x3aa   :  { %v646_v25 = vpop.eup %645 }
 0x3ab   :  { %380 = vadd.xlane.f32.xlu0 %v646_v25 }
 0x438   :  { %v381_v26 = vpop.xlane.xlu0 %380 }
 0x439   :  { %647 = vrcp.f32 %v381_v26 }
 0x443   :  { %v648_v13 = vpop.eup %647 }
 0x444   :  { %v383_v27 = vmul.f32 %v648_v13, %v381_v26 }
 0x446   :  { %v384_v28 = vsub.f32 2.0, %v383_v27 }
 0x448   :  { %v385_v29 = vmul.f32 %v648_v13, %v384_v28 }
 0x44a   :  { %v386_v30 = vmul.f32 %v646_v25, %v385_v29 }
 0x44c   :  { %387 = vst [vmem:[#allocation5] sm:$0xff] %v386_v30 }
 0x44d   :  { %682 = shalt.err (!%p679_p12)
}
 0x44e   :  { %s683_s17 = scalar_lea.hbm %s808_s3, 128 }
 0x44f   :  { %p684_p13 = scmp.ne.s32.totalorder %s808_s3, %s683_s17  ;;  %p687_p0 = scmp.lt.u32.totalorder %s683_s17, %s808_s3 }
 0x451   :  { %p689_p1 = pnand %p687_p0, %p684_p13 }
 0x453   :  { %692 = shalt.err (!%p689_p1)
}
 0x454   :  { %397 = dma.vmem_to_hbm [thread:$0]  %s395_s14, 128, %s808_s3, [#allocation4]  }
 0x455   :  { %695 = dma.done.wait [#allocation4], 128  }
 0x456   :  { %696 = vsyncadd [#allocation4], 4294967168 }
 0x457   :  { %401 = vsyncpa [#allocation3], 1 }
 0x458   :  { %402 = vsyncpa [#allocation4], 1 }

</bundles_post_ra>
